<compile_context>
chip_gen: v6e
topology: v6e:2x2x1
jax: 0.10.0
libtpu: 0.0.40
codegen_flags: <defaults>
</compile_context>

<pallas_src>
import functools

import jax
import jax.numpy as jnp
from jax.experimental import pallas as pl
from jax.experimental.pallas import tpu as pltpu


def _attn_kernel(x_ref, y_ref, wT_ref, b_ref, xatt_ref, yatt_ref, att_ref, *,
                 mxu_dtype):
    """One grid step processes a block of `bb` batch elements."""
    x = x_ref[...]                      # (bb, Lx, D)   input dtype
    y = y_ref[...]                      # (bb, Ly, D)
    wT = wT_ref[...]                    # (D, D) == torch W.T
    bias = b_ref[...]                   # (1, D)

    bb, Lx, D = x.shape
    Ly = y.shape[1]
    Lyp = att_ref.shape[2]              # lane-padded Ly (multiple of 128)

    # --- Linear(x): one wide MXU matmul on the stacked (bb*Lx, D) tile. -----
    xw = jnp.dot(x.reshape(bb * Lx, D).astype(mxu_dtype), wT.astype(mxu_dtype),
                 preferred_element_type=jnp.float32)
    xw = (xw + bias.astype(jnp.float32)).reshape(bb, Lx, D)       # f32

    xm = x.astype(mxu_dtype)
    ym = y.astype(mxu_dtype)

    # --- attention = _x @ y^T  (batched; transpose fused into the MXU feed). -
    att = jax.lax.dot_general(
        xw.astype(mxu_dtype), ym, (((2,), (2,)), ((0,), (0,))),
        preferred_element_type=jnp.float32)                       # (bb, Lx, Ly)

    # Lane-dense att store: pad the last dim to a multiple of 128 so the store
    # is a full-width unmasked vst and the HBM writeback is dense.  The wrapper
    # slices the zero pad off (only triggers when Ly % 128 != 0).
    if Lyp != Ly:
        att_store = jnp.concatenate(
            [att, jnp.zeros((bb, Lx, Lyp - Ly), jnp.float32)], axis=-1)
    else:
        att_store = att
    att_ref[...] = att_store.astype(att_ref.dtype)

    # --- softmax over dim=2 (Ly), then @ y.  Softmax math stays in f32 and
    #     uses exact division (approx reciprocal broke the 1e-3 parity check).
    m2 = jnp.max(att, axis=2, keepdims=True)
    e2 = jnp.exp(att - m2)
    p2 = e2 / jnp.sum(e2, axis=2, keepdims=True)
    xatt = jax.lax.dot_general(
        p2.astype(mxu_dtype), ym, (((2,), (1,)), ((0,), (0,))),
        preferred_element_type=jnp.float32)                       # (bb, Lx, D)
    xatt_ref[...] = xatt.astype(xatt_ref.dtype)

    # --- softmax over dim=1 (Lx); the transpose(2,1)@x is expressed directly
    #     as a contraction over Lx, so p1^T is never materialized.
    m1 = jnp.max(att, axis=1, keepdims=True)
    e1 = jnp.exp(att - m1)
    p1 = e1 / jnp.sum(e1, axis=1, keepdims=True)
    yatt = jax.lax.dot_general(
        p1.astype(mxu_dtype), xm, (((1,), (1,)), ((0,), (0,))),
        preferred_element_type=jnp.float32)                       # (bb, Ly, D)
    yatt_ref[...] = yatt.astype(yatt_ref.dtype)


def _vmem_budget_bytes():
    # Generation-aware budget: ~3/4 of physical VMEM, capped at 112 MiB
    # (v5e/v6e: 128 MiB -> 96 MiB; v7x: 64 MiB -> 48 MiB).
    try:
        cap = pltpu.get_tpu_info().vmem_capacity_bytes
    except Exception:
        cap = 128 * 1024 * 1024
    return min((cap * 3) // 4, 112 * 1024 * 1024)


def _largest_divisor_leq(n, k):
    for d in range(max(1, min(k, n)), 0, -1):
        if n % d == 0:
            return d
    return 1


def _pick_batch_block(B, batch_block):
    bb = _largest_divisor_leq(B, batch_block)
    # v7x megacore: keep the "parallel" batch grid axis >= 2 steps so both
    # TensorCores get work (harmless on single-TC v5e/v6e).
    if bb == B and B > 1:
        bb = _largest_divisor_leq(B, B // 2)
    return bb


def _step_vmem_bytes(bb, Lx, Ly, Lyp, D, in_isize, out_isize):
    # Double-buffered input/output blocks + weights + live f32 temporaries
    # (xw plus ~3 quadratic (bb,Lx,Ly) softmax intermediates).
    blocks = (bb * Lx * D * in_isize            # x
              + bb * Ly * D * in_isize          # y
              + bb * Lx * D * out_isize         # x_attention
              + bb * Ly * D * out_isize         # y_attention
              + bb * Lx * Lyp * out_isize)      # attention (lane-padded)
    weights = (D * D + D) * 4
    temps = 4 * (bb * Lx * D + 3 * bb * Lx * Ly)
    return 2 * blocks + 2 * weights + temps


def base_attention(x, y, w, b, *, batch_block=8, mxu_dtype=None):
    """x: (B, Lx, D), y: (B, Ly, D), w: torch Linear weight (D, D), b: (D,).

    Returns (x_attention, y_attention, attention) matching BaseAttention.forward.
    Pass mxu_dtype=jnp.bfloat16 to feed the MXU in bf16 (f32 accumulation).
    """
    B, Lx, D = x.shape
    _, Ly, _ = y.shape
    out_dtype = x.dtype
    mxu_dtype = x.dtype if mxu_dtype is None else mxu_dtype

    Lyp = pl.cdiv(Ly, 128) * 128                # lane-dense att block width

    budget = int(_vmem_budget_bytes())
    in_isize = jnp.dtype(x.dtype).itemsize
    out_isize = jnp.dtype(out_dtype).itemsize

    bb = _pick_batch_block(B, batch_block)
    while bb > 1 and _step_vmem_bytes(bb, Lx, Ly, Lyp, D,
                                      in_isize, out_isize) > budget:
        bb = _largest_divisor_leq(B, bb - 1)
    nb = B // bb
    # TODO(synk): for Lx/Ly in the ~1k range add an Lx-tile "arbitrary" grid
    # axis with a two-pass column softmax (m1/sum1 in VMEM scratch) so the
    # quadratic (bb, Lx, Ly) att block never lives whole in VMEM (required on
    # v7x's 64 MiB for long sequences).

    wT = jnp.asarray(w).T                       # kernel computes x @ W^T + b
    b2 = jnp.asarray(b).reshape(1, D)

    # W^T / bias are fetched once (constant index map); single-buffer them when
    # they get big enough to matter for the VMEM budget.
    if D >= 512:
        w_spec = pl.BlockSpec((D, D), lambda i: (0, 0),
                              pipeline_mode=pl.Buffered(1))
        b_spec = pl.BlockSpec((1, D), lambda i: (0, 0),
                              pipeline_mode=pl.Buffered(1))
    else:
        w_spec = pl.BlockSpec((D, D), lambda i: (0, 0))
        b_spec = pl.BlockSpec((1, D), lambda i: (0, 0))

    out_shapes = (
        jax.ShapeDtypeStruct((B, Lx, D), out_dtype),     # x_attention
        jax.ShapeDtypeStruct((B, Ly, D), out_dtype),     # y_attention
        jax.ShapeDtypeStruct((B, Lx, Lyp), out_dtype),   # attention (lane-padded)
    )

    kernel = functools.partial(_attn_kernel, mxu_dtype=mxu_dtype)

    x_att, y_att, att = pl.pallas_call(
        kernel,
        out_shape=out_shapes,
        grid_spec=pltpu.PrefetchScalarGridSpec(
            num_scalar_prefetch=0,
            grid=(nb,),
            in_specs=[
                pl.BlockSpec((bb, Lx, D), lambda i: (i, 0, 0)),   # x
                pl.BlockSpec((bb, Ly, D), lambda i: (i, 0, 0)),   # y
                w_spec,                                           # W^T (shared)
                b_spec,                                           # bias (shared)
            ],
            out_specs=[
                pl.BlockSpec((bb, Lx, D), lambda i: (i, 0, 0)),
                pl.BlockSpec((bb, Ly, D), lambda i: (i, 0, 0)),
                pl.BlockSpec((bb, Lx, Lyp), lambda i: (i, 0, 0)),
            ],
        ),
        compiler_params=pltpu.CompilerParams(
            dimension_semantics=("parallel",),
            vmem_limit_bytes=budget),
    )(x, y, wT, b2)

    if Lyp != Ly:
        att = att[..., :Ly]
    return x_att, y_att, att


def _reference(x, y, w, b):
    hi = jax.lax.Precision.HIGHEST
    _x = jnp.einsum("bld,od->blo", x, w, precision=hi) + b
    att = jnp.einsum("bld,bkd->blk", _x, y, precision=hi)
    x_att = jnp.einsum("blk,bkd->bld", jax.nn.softmax(att, axis=2), y,
                       precision=hi)
    y_att = jnp.einsum("bkl,bld->bkd",
                       jax.nn.softmax(att, axis=1).transpose(0, 2, 1), x,
                       precision=hi)
    return x_att, y_att, att


if __name__ == "__main__":
    key = jax.random.PRNGKey(0)
    B, Lx, Ly, D = 2, 8, 16, 128   # d_hidden=128 (module default); small seqs

    kx, ky, kw, kb = jax.random.split(key, 4)
    x = jax.random.normal(kx, (B, Lx, D), dtype=jnp.float32)
    y = jax.random.normal(ky, (B, Ly, D), dtype=jnp.float32)
    # Deterministic Linear params (torch layout: weight (out, in), bias (out,))
    bound = 1.0 / (D ** 0.5)
    w = jax.random.uniform(kw, (D, D), minval=-bound, maxval=bound,
                           dtype=jnp.float32)
    b = jax.random.uniform(kb, (D,), minval=-bound, maxval=bound,
                           dtype=jnp.float32)

    # Exact f32 path: must match the reference tightly.
    x_att, y_att, att = jax.block_until_ready(base_attention(x, y, w, b))

    rx, ry, ra = _reference(x, y, w, b)
    assert att.shape == (B, Lx, Ly) and x_att.shape == (B, Lx, D) \
        and y_att.shape == (B, Ly, D)
    assert jnp.allclose(att, ra, atol=2e-3, rtol=2e-3), "attention mismatch"
    assert jnp.allclose(x_att, rx, atol=2e-3, rtol=2e-3), "x_attention mismatch"
    assert jnp.allclose(y_att, ry, atol=2e-3, rtol=2e-3), "y_attention mismatch"

    # bf16 MXU-feed path: smoke-test that it compiles and runs (accuracy is
    # intentionally looser, so only verify finiteness; parity is checked above).
    xb, yb, ab = jax.block_until_ready(
        base_attention(x, y, w, b, mxu_dtype=jnp.bfloat16))
    assert all(bool(jnp.all(jnp.isfinite(t))) for t in (xb, yb, ab))

    print("KERNEL_OK")
</pallas_src>

<mosaic_0001>
module attributes {stable_mosaic.version = 11 : i64} {
  func.func @_attn_kernel(%arg0: i32, %arg1: memref<1x8x128xf32, #tpu.memory_space<vmem>>, %arg2: memref<1x16x128xf32, #tpu.memory_space<vmem>>, %arg3: memref<128x128xf32, #tpu.memory_space<vmem>>, %arg4: memref<1x128xf32, #tpu.memory_space<vmem>>, %arg5: memref<1x8x128xf32, #tpu.memory_space<vmem>>, %arg6: memref<1x16x128xf32, #tpu.memory_space<vmem>>, %arg7: memref<1x8x128xf32, #tpu.memory_space<vmem>>) attributes {dimension_semantics = [#tpu.dimension_semantics<parallel>], iteration_bounds = array<i64: 2>, scalar_prefetch = 0 : i64, scratch_operands = 0 : i64, tpu.core_type = #tpu.core_type<tc>, window_params = [{transform_indices = @transform_0, window_bounds = array<i64: 1, 8, 128>}, {transform_indices = @transform_1, window_bounds = array<i64: 1, 16, 128>}, {pipeline_mode = #tpu.pipeline_mode<synchronous>, transform_indices = @transform_2, window_bounds = array<i64: 128, 128>}, {pipeline_mode = #tpu.pipeline_mode<synchronous>, transform_indices = @transform_3, window_bounds = array<i64: 1, 128>}, {transform_indices = @transform_4, window_bounds = array<i64: 1, 8, 128>}, {transform_indices = @transform_5, window_bounds = array<i64: 1, 16, 128>}, {transform_indices = @transform_6, window_bounds = array<i64: 1, 8, 128>}]} {
    %c0 = arith.constant 0 : index
    %c0_0 = arith.constant 0 : index
    %c0_1 = arith.constant 0 : index
    %0 = vector.load %arg1[%c0, %c0_0, %c0_1] : memref<1x8x128xf32, #tpu.memory_space<vmem>>, vector<1x8x128xf32>
    %c0_2 = arith.constant 0 : index
    %c0_3 = arith.constant 0 : index
    %c0_4 = arith.constant 0 : index
    %1 = vector.load %arg2[%c0_2, %c0_3, %c0_4] : memref<1x16x128xf32, #tpu.memory_space<vmem>>, vector<1x16x128xf32>
    %c0_5 = arith.constant 0 : index
    %c0_6 = arith.constant 0 : index
    %2 = vector.load %arg3[%c0_5, %c0_6] : memref<128x128xf32, #tpu.memory_space<vmem>>, vector<128x128xf32>
    %c0_7 = arith.constant 0 : index
    %c0_8 = arith.constant 0 : index
    %3 = vector.load %arg4[%c0_7, %c0_8] : memref<1x128xf32, #tpu.memory_space<vmem>>, vector<1x128xf32>
    %4 = vector.shape_cast %0 : vector<1x8x128xf32> to vector<8x128xf32>
    %cst = arith.constant dense<0.000000e+00> : vector<8x128xf32>
    %5 = tpu.matmul %4, %2, %cst {dimension_numbers = #tpu.dot_dimension_numbers<[1], [0], [0], [1], [0, 0, 1, 1], [], []>} : vector<8x128xf32>, vector<128x128xf32>, vector<8x128xf32> -> vector<8x128xf32>
    %6 = vector.broadcast %3 : vector<1x128xf32> to vector<8x128xf32>
    %7 = arith.addf %5, %6 : vector<8x128xf32>
    %8 = vector.shape_cast %7 : vector<8x128xf32> to vector<1x8x128xf32>
    %cst_9 = arith.constant dense<0.000000e+00> : vector<1x8x16xf32>
    %9 = tpu.matmul %8, %1, %cst_9 {dimension_numbers = #tpu.dot_dimension_numbers<[2], [2], [1], [1], [0, 0, 0, 1, 1, 1], [0], [0]>} : vector<1x8x128xf32>, vector<1x16x128xf32>, vector<1x8x16xf32> -> vector<1x8x16xf32>
    %cst_10 = arith.constant 0.000000e+00 : f32
    %10 = vector.broadcast %cst_10 : f32 to vector<1x8x112xf32>
    %11 = tpu.concatenate %9, %10 in 2 : vector<1x8x16xf32>, vector<1x8x112xf32> -> vector<1x8x128xf32>
    %c0_11 = arith.constant 0 : index
    %c0_12 = arith.constant 0 : index
    %c0_13 = arith.constant 0 : index
    %12 = vector.load %arg7[%c0_11, %c0_12, %c0_13] : memref<1x8x128xf32, #tpu.memory_space<vmem>>, vector<1x8x128xf32>
    tpu.vector_store %arg7[%c0_11, %c0_12, %c0_13], %11 {strides = array<i32>} : memref<1x8x128xf32, #tpu.memory_space<vmem>>, vector<1x8x128xf32>,
    %cst_14 = arith.constant dense<0xFF800000> : vector<1x8xf32>
    %13 = vector.multi_reduction <maximumf>, %9, %cst_14 [2] : vector<1x8x16xf32> to vector<1x8xf32>
    %14 = vector.shape_cast %13 : vector<1x8xf32> to vector<1x8x1xf32>
    %15 = vector.broadcast %14 : vector<1x8x1xf32> to vector<1x8x16xf32>
    %16 = arith.subf %9, %15 : vector<1x8x16xf32>
    %17 = math.exp %16 : vector<1x8x16xf32>
    %cst_15 = arith.constant dense<0.000000e+00> : vector<1x8xf32>
    %18 = vector.multi_reduction <add>, %17, %cst_15 [2] : vector<1x8x16xf32> to vector<1x8xf32>
    %19 = vector.shape_cast %18 : vector<1x8xf32> to vector<1x8x1xf32>
    %20 = vector.broadcast %19 : vector<1x8x1xf32> to vector<1x8x16xf32>
    %21 = arith.divf %17, %20 : vector<1x8x16xf32>
    %cst_16 = arith.constant dense<0.000000e+00> : vector<1x8x128xf32>
    %22 = tpu.matmul %21, %1, %cst_16 {dimension_numbers = #tpu.dot_dimension_numbers<[2], [1], [1], [2], [0, 0, 0, 1, 1, 2], [0], [0]>} : vector<1x8x16xf32>, vector<1x16x128xf32>, vector<1x8x128xf32> -> vector<1x8x128xf32>
    %c0_17 = arith.constant 0 : index
    %c0_18 = arith.constant 0 : index
    %c0_19 = arith.constant 0 : index
    %23 = vector.load %arg5[%c0_17, %c0_18, %c0_19] : memref<1x8x128xf32, #tpu.memory_space<vmem>>, vector<1x8x128xf32>
    tpu.vector_store %arg5[%c0_17, %c0_18, %c0_19], %22 {strides = array<i32>} : memref<1x8x128xf32, #tpu.memory_space<vmem>>, vector<1x8x128xf32>,
    %cst_20 = arith.constant dense<0xFF800000> : vector<1x16xf32>
    %24 = vector.multi_reduction <maximumf>, %9, %cst_20 [1] : vector<1x8x16xf32> to vector<1x16xf32>
    %25 = vector.shape_cast %24 : vector<1x16xf32> to vector<1x1x16xf32>
    %26 = vector.broadcast %25 : vector<1x1x16xf32> to vector<1x8x16xf32>
    %27 = arith.subf %9, %26 : vector<1x8x16xf32>
    %28 = math.exp %27 : vector<1x8x16xf32>
    %cst_21 = arith.constant dense<0.000000e+00> : vector<1x16xf32>
    %29 = vector.multi_reduction <add>, %28, %cst_21 [1] : vector<1x8x16xf32> to vector<1x16xf32>
    %30 = vector.shape_cast %29 : vector<1x16xf32> to vector<1x1x16xf32>
    %31 = vector.broadcast %30 : vector<1x1x16xf32> to vector<1x8x16xf32>
    %32 = arith.divf %28, %31 : vector<1x8x16xf32>
    %cst_22 = arith.constant dense<0.000000e+00> : vector<1x16x128xf32>
    %33 = tpu.matmul %32, %0, %cst_22 {dimension_numbers = #tpu.dot_dimension_numbers<[1], [1], [2], [2], [0, 0, 0, 2, 1, 2], [0], [0]>} : vector<1x8x16xf32>, vector<1x8x128xf32>, vector<1x16x128xf32> -> vector<1x16x128xf32>
    %c0_23 = arith.constant 0 : index
    %c0_24 = arith.constant 0 : index
    %c0_25 = arith.constant 0 : index
    %34 = vector.load %arg6[%c0_23, %c0_24, %c0_25] : memref<1x16x128xf32, #tpu.memory_space<vmem>>, vector<1x16x128xf32>
    tpu.vector_store %arg6[%c0_23, %c0_24, %c0_25], %33 {strides = array<i32>} : memref<1x16x128xf32, #tpu.memory_space<vmem>>, vector<1x16x128xf32>,
    return
  }
  func.func @transform_0(%arg0: i32) -> (i32, i32, i32) {
    %c0_i32 = arith.constant 0 : i32
    %c0_i32_0 = arith.constant 0 : i32
    %c0_i32_1 = arith.constant 0 : i32
    return %arg0, %c0_i32, %c0_i32_0 : i32, i32, i32
  }
  func.func @transform_1(%arg0: i32) -> (i32, i32, i32) {
    %c0_i32 = arith.constant 0 : i32
    %c0_i32_0 = arith.constant 0 : i32
    %c0_i32_1 = arith.constant 0 : i32
    return %arg0, %c0_i32, %c0_i32_0 : i32, i32, i32
  }
  func.func @transform_2(%arg0: i32) -> (i32, i32) {
    %c0_i32 = arith.constant 0 : i32
    %c0_i32_0 = arith.constant 0 : i32
    %c0_i32_1 = arith.constant 0 : i32
    return %c0_i32, %c0_i32_0 : i32, i32
  }
  func.func @transform_3(%arg0: i32) -> (i32, i32) {
    %c0_i32 = arith.constant 0 : i32
    %c0_i32_0 = arith.constant 0 : i32
    %c0_i32_1 = arith.constant 0 : i32
    return %c0_i32, %c0_i32_0 : i32, i32
  }
  func.func @transform_4(%arg0: i32) -> (i32, i32, i32) {
    %c0_i32 = arith.constant 0 : i32
    %c0_i32_0 = arith.constant 0 : i32
    %c0_i32_1 = arith.constant 0 : i32
    return %arg0, %c0_i32, %c0_i32_0 : i32, i32, i32
  }
  func.func @transform_5(%arg0: i32) -> (i32, i32, i32) {
    %c0_i32 = arith.constant 0 : i32
    %c0_i32_0 = arith.constant 0 : i32
    %c0_i32_1 = arith.constant 0 : i32
    return %arg0, %c0_i32, %c0_i32_0 : i32, i32, i32
  }
  func.func @transform_6(%arg0: i32) -> (i32, i32, i32) {
    %c0_i32 = arith.constant 0 : i32
    %c0_i32_0 = arith.constant 0 : i32
    %c0_i32_1 = arith.constant 0 : i32
    return %arg0, %c0_i32, %c0_i32_0 : i32, i32, i32
  }
}

</mosaic_0001>

<bundles_post_ra>
// kernel: tpu_custom_call.1
= control target key start
LH: loop header
LB: loop body
LE: loop exit
PB: predicated region body
PF: predicated region fallthrough
CT: control target
= control target key end

     0   :  { %s1752_s0 = inlined_call_operand.hbm [shape: f32[2,8,128], index: 0, kind: input, shape index: {}]   ;;  %s1753_s1 = inlined_call_operand.hbm [shape: f32[2,16,128], index: 1, kind: input, shape index: {}]   ;;  %s1754_s2 = inlined_call_operand.hbm [shape: f32[128,128], index: 2, kind: input, shape index: {}]   ;;  %s1755_s3 = inlined_call_operand.vmem [shape: f32[1,128], index: 3, kind: input, shape index: {}]   ;;  %s1756_s4 = inlined_call_operand.hbm [shape: f32[2,8,128], index: 4, kind: output, shape index: {0}]   ;;  %s1757_s5 = inlined_call_operand.hbm [shape: f32[2,16,128], index: 5, kind: output, shape index: {1}]   ;;  %s1758_s6 = inlined_call_operand.hbm [shape: f32[2,8,128], index: 6, kind: output, shape index: {2}]  }
   0x1   :  { %1768 = sst [smem:[#allocation17_spill]] %s1754_s2 }
   0x2   :  { %12 = vsyncpa [#allocation3], 0 }
   0x3   :  { %14 = vsyncpa [#allocation3 + $0x1], 0 }
   0x4   :  { %15 = vsyncpa [#allocation6], 0 }
   0x5   :  { %17 = vsyncpa [#allocation6 + $0x1], 0 }
   0x6   :  { %18 = vsyncpa [#allocation4], 0 }
   0x7   :  { %20 = vsyncpa [#allocation4 + $0x1], 0 }
   0x8   :  { %21 = vsyncpa [#allocation10], 0 }
   0x9   :  { %23 = vsyncpa [#allocation10 + $0x1], 0  ;;  %s1399_s21 = smov 0   ;;  %s1401_s22 = smov 0  }
   0xa   :  { %s1403_s23 = smov 0   ;;  %s1405_s24 = smov 0  }
   0xb LB: > { %s1420_s25 = sadd.s32 4294967295, %s1350_s24   ;;  %s1759_s26 = sadd.s32 4294967294, %s1350_s24   ;;  %s1350_s24 = sphi %s1405_s24, %s1793_s24   ;;  %s1346_s23 = sphi %s1403_s23, %s1792_s23   ;;  %s1342_s22 = sphi %s1401_s22, %s1791_s22   ;;  %s1338_s21 = sphi %s1399_s21, %s1790_s21  }
   0xc   : > { %p49_p0 = scmp.ne.s32.totalorder %s1342_s22, %s1338_s21  ;;  %p1761_p1 = scmp.eq.s32.totalorder %s1420_s25, 0 }
   0xd   : > { %p147_p3 = scmp.eq.s32.totalorder %s1759_s26, 1  ;;  %p944_p5 = scmp.ge.s32.totalorder %s1350_s24, 1 }
   0xe   : > { %p1431_p4 = por %p1761_p1, %p49_p0  ;;  %p206_p7 = scmp.lt.s32.totalorder %s1350_s24, 3 }
   0xf   : > { %p1436_p6 = por %p147_p3, %p49_p0  ;;  %s1352_s30 = smov [#allocation7]  }
  0x10   : > { %s1769_s27 = scalar_select %p1431_p4, 1, 0 }
  0x11   : > { %s1770_s28 = scalar_select %p1436_p6, 1, 0 }
  0x12   : > { %p1441_p8 = pnand %p944_p5, %p206_p7  ;;  %s218_s7 = sshll.u32 %s1352_s30, 4  ;;  %s219_s7 = int_to_ptr.vmem [resolvable:$true] %s218_s7 }
  0x13   : > { %s1455_s9 = sadd.s32 1, %s1350_s24   ;;  %s36_s10 = sadd.s32 1, %s1346_s23 }
  0x14   : > { %s1771_s29 = scalar_select %p1441_p8, 1, 0 }
  0x15   : > { %p1068_p9 = pneg %p1441_p8  ;;  %s33_s11 = ssub.s32 %s1350_s24, %s1455_s9 }
  0x16   : > { %s1151_s12 = scalar_lea.vmem %s219_s7, 2048  ;;  %p1159_p5 = scmp.lt.s32.totalorder %s219_s7, %s219_s7 }
  0x17   : > { %p1450_p11 = pnand %p1068_p9, %p1761_p1  ;;  %p1152_p13 = scmp.ne.s32.totalorder %s219_s7, %s1151_s12 }
  0x18   : > { %p1160_p7 = scmp.lt.s32.totalorder %s1151_s12, %s1151_s12 }
  0x19   : > { %p1142_p12 = pneg %p1450_p11 }
  0x1a   : > { %p1161_p10 = por %p1160_p7, %p1159_p5 }
  0x1b   : > { %p1154_p0 = pnand %p1152_p13, %p1142_p12 }
  0x1d   : > { %p1155_p3 = pneg %p1154_p0 }
  0x1f   : > { %p1162_p2 = pnand %p1161_p10, %p1155_p3 }
  0x21   : > { %1165 = shalt.err (!%p1162_p2)
}
  0x22   : > { %s1760_s13 = smov 128   ;;  %s1762_s14 = smov 8  }
  0x23   : > { %s1773_s2 = sld [smem:[#allocation17_spill]]  ;;  %p34_p2 = scmp.eq.s32.totalorder %s33_s11, 0 }
  0x24   : > { %p43_p9 = scmp.ne.s32.totalorder %s1346_s23, %s1342_s22  ;;  %p44_p10 = scmp.eq.s32.totalorder %s1350_s24, 0 }
  0x25   : > { %p1090_p12 = scmp.lt.s32.totalorder %s1350_s24, 2  ;;  %p1774_p0 = scmp.eq.s32.totalorder %s1420_s25, 1 }
  0x26   : > { %s1475_s17 = scalar_select %p34_p2, %s1346_s23, %s36_s10  }
  0x27   : > { %p45_p13 = por %p44_p10, %p43_p9  ;;  %p1479_p3 = por %p1774_p0, %p43_p9 }
  0x28   : > { %s1484_s19 = sand.u32 1, %s1346_s23   ;;  %s948_s20 = sshll.u32 %s1350_s24, 7 }
  0x29   : > { %1071 = dma.hbm_to_vmem [thread:$0]  (!%p1450_p11), %s1773_s2, 2048, %s219_s7, [#allocation6], %s1760_s13, %s1760_s13, %s1762_s14  }
  0x2a   : > { %s1775_s18 = scalar_select %p1479_p3, 1, 0 }
  0x2b   : > { %s947_s30 = sshll.u32 %s1484_s19, 3  ;;  %s1491_s11 = scalar_lea.hbm %s1752_s0, %s948_s20 }
  0x2c   : > { %s239_s10 = scalar_lea.vmem [#allocation2], %s947_s30  ;;  %p1493_p11 = pnand %p1090_p12, %p45_p13 }
  0x2d   : > { %s246_s12 = sshll.u32 %s239_s10, 4  ;;  %s949_s16 = sshll.u32 %s1484_s19, 4  ;;  %s247_s12 = int_to_ptr.vmem [resolvable:$true] %s246_s12 }
  0x2e   : > { %s236_s26 = scalar_lea.sflag [#allocation3], %s1484_s19  ;;  %s1166_s13 = scalar_lea.hbm %s1491_s11, 128 }
  0x2f   : > { %p1167_p5 = scmp.ne.s32.totalorder %s1491_s11, %s1166_s13  ;;  %p1168_p7 = pneg %p1493_p11 }
  0x30   : > { %s1171_s7 = scalar_lea.hbm %s1752_s0, 256  ;;  %p1172_p10 = scmp.lt.s32.totalorder %s1491_s11, %s1752_s0 }
  0x31   : > { %p1169_p2 = pnand %p1168_p7, %p1167_p5  ;;  %p1173_p12 = scmp.lt.s32.totalorder %s1171_s7, %s1166_s13 }
  0x33   : > { %p1170_p9 = pneg %p1169_p2  ;;  %p1174_p13 = por %p1173_p12, %p1172_p10 }
  0x35   : > { %p1175_p0 = pnand %p1174_p13, %p1170_p9 }
  0x37   : > { %1178 = shalt.err (!%p1175_p0)
}
  0x38   : > { %s1179_s19 = scalar_lea.vmem %s247_s12, 128  ;;  %s1355_s14 = smov [#allocation2]  }
  0x39   : > { %p1180_p1 = scmp.ne.s32.totalorder %s247_s12, %s1179_s19  ;;  %s1184_s2 = sshll.u32 %s1355_s14, 4  ;;  %s1185_s2 = int_to_ptr.vmem [resolvable:$false] %s1184_s2 }
  0x3a   : > { %s1186_s20 = scalar_lea.vmem %s1185_s2, 256  ;;  %p1187_p2 = scmp.lt.s32.totalorder %s247_s12, %s1185_s2 }
  0x3b   : > { %p1182_p6 = pnand %p1180_p1, %p1168_p7  ;;  %p1188_p3 = scmp.lt.s32.totalorder %s1186_s20, %s1179_s19 }
  0x3d   : > { %p1183_p5 = pneg %p1182_p6  ;;  %p1189_p4 = por %p1188_p3, %p1187_p2 }
  0x3f   : > { %p1190_p8 = pnand %p1189_p4, %p1183_p5 }
  0x41   : > { %1193 = shalt.err (!%p1190_p8)
}
  0x42   : > { %1075 = dma.hbm_to_vmem [thread:$0]  (!%p1493_p11), %s1491_s11, 128, %s247_s12, %s236_s26  }
  0x43   : > { %s257_s13 = scalar_lea.vmem [#allocation5], %s949_s16  ;;  %s253_s7 = sand.u32 1, %s1350_s24  }
  0x44   : > { %s264_s30 = sshll.u32 %s257_s13, 4  ;;  %s972_s14 = sshll.u32 %s1350_s24, 8  ;;  %s1520_s30 = int_to_ptr.vmem [resolvable:$true] %s264_s30 }
  0x45   : > { %s1526_s2 = scalar_lea.hbm %s1753_s1, %s972_s14  ;;  %s254_s19 = scalar_lea.sflag [#allocation6], %s253_s7 }
  0x46   : > { %s1194_s20 = scalar_lea.hbm %s1526_s2, 256  ;;  %s1199_s12 = scalar_lea.hbm %s1753_s1, 512 }
  0x47   : > { %p1195_p1 = scmp.ne.s32.totalorder %s1526_s2, %s1194_s20  ;;  %p1200_p8 = scmp.lt.s32.totalorder %s1526_s2, %s1753_s1 }
  0x48   : > { %p1201_p3 = scmp.lt.s32.totalorder %s1199_s12, %s1194_s20 }
  0x49   : > { %p1197_p4 = pnand %p1195_p1, %p1168_p7 }
  0x4a   : > { %p1202_p9 = por %p1201_p3, %p1200_p8 }
  0x4b   : > { %p1198_p6 = pneg %p1197_p4 }
  0x4d   : > { %p1203_p10 = pnand %p1202_p9, %p1198_p6 }
  0x4f   : > { %1206 = shalt.err (!%p1203_p10)
}
  0x50   : > { %s1207_s7 = scalar_lea.vmem %s1520_s30, 256  ;;  %s1356_s14 = smov [#allocation5]  }
  0x51   : > { %p1208_p12 = scmp.ne.s32.totalorder %s1520_s30, %s1207_s7  ;;  %s1212_s8 = sshll.u32 %s1356_s14, 4  ;;  %s1213_s8 = int_to_ptr.vmem [resolvable:$false] %s1212_s8 }
  0x52   : > { %s1214_s10 = scalar_lea.vmem %s1213_s8, 512  ;;  %p1215_p5 = scmp.lt.s32.totalorder %s1520_s30, %s1213_s8 }
  0x53   : > { %p1210_p13 = pnand %p1208_p12, %p1168_p7  ;;  %p1216_p2 = scmp.lt.s32.totalorder %s1214_s10, %s1207_s7 }
  0x55   : > { %p1211_p0 = pneg %p1210_p13  ;;  %p1217_p1 = por %p1216_p2, %p1215_p5 }
  0x57   : > { %p1218_p4 = pnand %p1217_p1, %p1211_p0 }
  0x59   : > { %1221 = shalt.err (!%p1218_p4)
}
  0x5a   : > { %s1777_s20 = smov 8   ;;  %s1778_s26 = smov 128  }
  0x5b   : > { %1078 = dma.hbm_to_vmem [thread:$0]  (!%p1493_p11), %s1526_s2, 256, %s1520_s30, %s254_s19, %s1778_s26, %s1778_s26, %s1777_s20  }
  0x5c   : > { %p1779_p7 = scmp.ne.s32.totalorder %s1771_s29, 0 }
  0x5d   : > { %s1556_s11 = sand.u32 (!%p1779_p7), 1, %s1342_s22   ;;  %p1780_p6 = scmp.ne.s32.totalorder (!%p1779_p7), %s1769_s27, 0 }
  0x5e   : > { %276 = sbr.rel (%p1779_p7) target bundleno = 1094 (0x446), region = 36  ;;  %s1559_s12 = sshll.u32 (!%p1779_p7), %s1556_s11, 3 }
  0x5f   : > { %s279_s16 = scalar_lea.sflag (!%p1779_p7), [#allocation3], %s1556_s11  ;;  %s282_s15 = scalar_lea.vmem (!%p1779_p7), [#allocation2], %s1559_s12 }
  0x63   : > { %1317 = dma.done.wait (%p1780_p6), %s279_s16, 128  }
  0x64   : > { %1319 = vsyncadd (%p1780_p6), %s279_s16, 4294967168  ;;  %s1766_s29 = sand.u32 1, %s1420_s25   ;;  %s954_s30 = sshll.u32 %s1556_s11, 4 }
  0x65   : > { %s288_s2 = scalar_lea.sflag [#allocation6], %s1766_s29  ;;  %s1573_s19 = scalar_lea.vmem [#allocation5], %s954_s30 }
  0x66   : > { %1321 = dma.done.wait (%p1780_p6), %s288_s2, 256  }
  0x67   : > { %1323 = vsyncadd (%p1780_p6), %s288_s2, 4294967040  ;;  %p1781_p11 = scmp.eq.s32.totalorder %s1420_s25, 0 }
  0x69   : > { %1325 = dma.done.wait (%p1781_p11), [#allocation6], 2048   ;;  %p1782_p8 = pmov %p1781_p11 }
  0x6a   : > { %v1357_v0 = vmov 0.0   ;;  %vm1358_vm0 = vmmov 0   ;;  %v357_v1 = vld [vmem:[#allocation7 + $0x78] sm:$0xff]  ;;  %v356_v2 = vld [vmem:[#allocation7 + $0x70] sm:$0xff]  ;;  %v355_v3 = vld [vmem:[#allocation7 + $0x68] sm:$0xff]  ;;  %vm505_vm1 = vcmask 130048  }
  0x6b   : > { %1327 = vsyncadd (%p1782_p8), [#allocation6], 4294965248  ;;  %1000 = vmatprep.subr.mxu0 %v1357_v0  ;;  %1032 = vmatprep.mubr.msk.f32.mxu0 %vm1358_vm0, %v1357_v0  ;;  %v354_v4 = vld [vmem:[#allocation7 + $0x60] sm:$0xff]  ;;  %v341_v5 = vld [vmem:[%s1573_s19 + $0x8] sm:$0xff]  ;;  %s338_s7 = scalar_lea.vmem [#allocation11], %s1559_s12  ;;  %vm643_vm2 = vcmask 64512  }
  0x6c   : > { %1035 = vmatprep.subr.mxu1 %v1357_v0  ;;  %1039 = vmatprep.mubr.msk.f32.mxu1 %vm1358_vm0, %v1357_v0  ;;  %v353_v6 = vld [vmem:[#allocation7 + $0x58] sm:$0xff]  ;;  %v352_v7 = vld [vmem:[#allocation7 + $0x50] sm:$0xff]  ;;  %v351_v8 = vld [vmem:[#allocation7 + $0x48] sm:$0xff]  ;;  %s324_s14 = scalar_lea.vmem [#allocation8], %s1559_s12  ;;  %s1767_s10 = sshll.u32 %s1420_s25, 7 }
  0x6d   : > { %1001 = vmatpush3.msra.mxu0 %v357_v1  ;;  %1036 = vmatpush3.xpose.msra.mxu1 %v341_v5  ;;  %v350_v9 = vld [vmem:[#allocation7 + $0x40] sm:$0xff]  ;;  %v349_v10 = vld [vmem:[#allocation7 + $0x38] sm:$0xff]  ;;  %v348_v11 = vld [vmem:[#allocation7 + $0x30] sm:$0xff]  ;;  %s751_s8 = sshll.u32 %s324_s14, 4  ;;  %s1633_s16 = scalar_lea.hbm %s1756_s4, %s1767_s10  ;;  %s1626_s8 = int_to_ptr.vmem [resolvable:$true] %s751_s8 }
  0x6e   : > { %1002 = vmatprep.subr.mxu0 %v1357_v0  ;;  %1037 = vmatprep.subr.mxu1 %v1357_v0  ;;  %v347_v12 = vld [vmem:[#allocation7 + $0x28] sm:$0xff]  ;;  %v346_v13 = vld [vmem:[#allocation7 + $0x20] sm:$0xff]  ;;  %v345_v14 = vld [vmem:[#allocation7 + $0x18] sm:$0xff]  ;;  %s728_s27 = scalar_lea.sflag [#allocation4], %s1556_s11  ;;  %s1222_s13 = scalar_lea.vmem %s1626_s8, 128 }
  0x6f   : > { %1003 = vmatpush3.msra.mxu0 %v356_v2  ;;  %v344_v15 = vld [vmem:[#allocation7 + $0x10] sm:$0xff]  ;;  %v343_v16 = vld [vmem:[#allocation7 + $0x8] sm:$0xff]  ;;  %v342_v17 = vld [vmem:[#allocation7] sm:$0xff]  ;;  %p1223_p3 = scmp.ne.s32.totalorder %s1626_s8, %s1222_s13  ;;  %p1783_p9 = scmp.ne.s32.totalorder %s1775_s18, 0 }
  0x70   : > { %1004 = vmatprep.subr.mxu0 %v1357_v0  ;;  %v339_v18 = vld [vmem:[%s282_s15] sm:$0xff]  ;;  %v340_v19 = vld [vmem:[%s1573_s19] sm:$0xff]  ;;  %s1637_s15 = scalar_lea.vmem [#allocation9], %s954_s30  ;;  %s1359_s20 = smov [#allocation8]  }
  0x71   : > { %1005 = vmatpush3.msra.mxu0 %v355_v3  ;;  %1038 = vmatpush3.xpose.msra.mxu1 %v340_v19  ;;  %v959_v20 = vld [vmem:[%s1755_s3] ss:$0 sm:$0xff]  ;;  %s764_s2 = sshll.u32 %s1637_s15, 4  ;;  %p1224_p10 = pnand %p1223_p3, %p1783_p9  ;;  %s1664_s2 = int_to_ptr.vmem [resolvable:$true] %s764_s2 }
  0x72   : > { %1006 = vmatprep.subr.mxu0 %v1357_v0  ;;  %1042 = vmatprep.subr.mxu1 %v1357_v0  ;;  %s1226_s26 = sshll.u32 %s1359_s20, 4  ;;  %s1227_s26 = int_to_ptr.vmem [resolvable:$false] %s1226_s26 }
  0x73   : > { %1007 = vmatpush3.msra.mxu0 %v354_v4  ;;  %p1225_p12 = pneg %p1224_p10  ;;  %s1228_s29 = scalar_lea.vmem %s1227_s26, 256 }
  0x74   : > { %1008 = vmatprep.subr.mxu0 %v1357_v0  ;;  %p1229_p13 = scmp.lt.s32.totalorder %s1626_s8, %s1227_s26  ;;  %p1230_p0 = scmp.lt.s32.totalorder %s1228_s29, %s1222_s13 }
  0x75   : > { %1009 = vmatpush3.msra.mxu0 %v353_v6 }
  0x76   : > { %1010 = vmatprep.subr.mxu0 %v1357_v0  ;;  %p1231_p5 = por %p1230_p0, %p1229_p13 }
  0x77   : > { %1011 = vmatpush3.msra.mxu0 %v352_v7 }
  0x78   : > { %1012 = vmatprep.subr.mxu0 %v1357_v0  ;;  %p1232_p2 = pnand %p1231_p5, %p1225_p12 }
  0x79   : > { %1013 = vmatpush3.msra.mxu0 %v351_v8 }
  0x7a   : > { %1014 = vmatprep.subr.mxu0 %v1357_v0 }
  0x7b   : > { %1015 = vmatpush3.msra.mxu0 %v350_v9 }
  0x7c   : > { %1016 = vmatprep.subr.mxu0 %v1357_v0 }
  0x7d   : > { %1017 = vmatpush3.msra.mxu0 %v349_v10 }
  0x7e   : > { %1018 = vmatprep.subr.mxu0 %v1357_v0 }
  0x7f   : > { %1019 = vmatpush3.msra.mxu0 %v348_v11 }
  0x80   : > { %1020 = vmatprep.subr.mxu0 %v1357_v0 }
  0x81   : > { %1021 = vmatpush3.msra.mxu0 %v347_v12 }
  0x82   : > { %1022 = vmatprep.subr.mxu0 %v1357_v0 }
  0x83   : > { %1023 = vmatpush3.msra.mxu0 %v346_v13 }
  0x84   : > { %1024 = vmatprep.subr.mxu0 %v1357_v0 }
  0x85   : > { %1025 = vmatpush3.msra.mxu0 %v345_v14 }
  0x86   : > { %1026 = vmatprep.subr.mxu0 %v1357_v0 }
  0x87   : > { %1027 = vmatpush3.msra.mxu0 %v344_v15 }
  0x88   : > { %1028 = vmatprep.subr.mxu0 %v1357_v0 }
  0x89   : > { %1029 = vmatpush3.msra.mxu0 %v343_v16 }
  0x8a   : > { %1030 = vmatprep.subr.mxu0 %v1357_v0 }
  0x8b   : > { %1031 = vmatpush3.msra.mxu0 %v342_v17 }
  0x8c   : > { %1033 = vmatmul.mubr.f32.vlgmr.msra.gmra.mxu0 %v339_v18 }
 0x14c   : > { %v431_v21 = vpop.f32.mrf.mxu0 }
 0x14d   : > { %v432_v22 = vadd.f32 %v959_v20, %v431_v21 }
 0x14e   : > { %v1034_v23 = vpop.f32.mrf.mxu0 }
 0x14f   : > { %1040 = vmatmul.mubr.f32.vlgmr.msra.gmra.mxu1 %v432_v22 }
 0x150   : > { %1043 = vmatpush3.msra.mxu1 %v341_v5  ;;  %1046 = vmatprep.mubr.msk.f32.mxu1 %vm1358_vm0, %v1357_v0 }
 0x151   : > { %1044 = vmatprep.subr.mxu1 %v1357_v0 }
 0x152   : > { %1045 = vmatpush3.msra.mxu1 %v340_v19 }
 0x153   : > { %1049 = vmatprep.subr.mxu1 %v339_v18 }
 0x20f   : > { %v501_v24 = vpop.f32.mrf.mxu1 }
 0x210   : > { %v506_v25 = vsel %vm505_vm1, %v501_v24, 0.0  ;;  %v508_v26 = vsel %vm505_vm1, %v501_v24, -inf }
 0x211   : > { %507 = vst [vmem:[%s338_s7] sm:$0xff] %v506_v25  ;;  %509 = vmax.xlane.f32.xlu0 %v508_v26  ;;  %v593_v27 = vrot.slane %v508_v26, 4  ;;  %v1041_v28 = vpop.f32.mrf.mxu1 }
 0x213   : > { %v594_v29 = vmax.f32 %v508_v26, %v593_v27 }
 0x215   : > { %v595_v30 = vrot.slane %v594_v29, 2 }
 0x217   : > { %v596_v31 = vmax.f32 %v594_v29, %v595_v30 }
 0x219   : > { %v597_v32 = vrot.slane %v596_v31, 1 }
 0x21b   : > { %v598_v33 = vmax.f32 %v596_v31, %v597_v32 }
 0x21d   : > { %v599_v34 = vsub.f32 %v501_v24, %v598_v33 }
 0x21f   : > { %v600_v35 = vmul.f32 1.442695, %v599_v34 }
 0x221   : > { %1132 = vpow2.f32 %v600_v35 }
 0x22e   : > { %v1133_v36 = vpop.eup %1132 }
 0x22f   : > { %v602_v37 = vsel %vm505_vm1, %v1133_v36, 0.0 }
 0x230   : > { %v603_v38 = vrot.slane %v602_v37, 4 }
 0x232   : > { %v604_v39 = vadd.f32 %v603_v38, %v602_v37 }
 0x234   : > { %v605_v40 = vrot.slane %v604_v39, 2 }
 0x236   : > { %v606_v41 = vadd.f32 %v605_v40, %v604_v39 }
 0x238   : > { %v607_v42 = vrot.slane %v606_v41, 1 }
 0x23a   : > { %v608_v43 = vadd.f32 %v607_v42, %v606_v41 }
 0x23c   : > { %1134 = vrcp.f32 %v608_v43 }
 0x249   : > { %v1135_v44 = vpop.eup %1134 }
 0x24a   : > { %v610_v45 = vmul.f32 %v1135_v44, %v1133_v36 }
 0x24c   : > { %611 = vxpose.xlu1.b32.start.end [1/1] (short) (narrow) %v610_v45, 16 }
 0x29a   : > { %v510_v46 = vpop.xlane.xlu0 %509 }
 0x29b   : > { %v511_v47 = vsub.f32 %v501_v24, %v510_v46 }
 0x29d   : > { %v512_v48 = vmul.f32 1.442695, %v511_v47 }
 0x29f   : > { %1136 = vpow2.f32 %v512_v48 }
 0x2ac   : > { %v1137_v49 = vpop.eup %1136 }
 0x2ad   : > { %v514_v50 = vsel %vm505_vm1, %v1137_v49, 0.0 }
 0x2ae   : > { %515 = vadd.xlane.f32.xlu0 %v514_v50 }
 0x2c8   : > { %v627_v52 = vpop.trf.xlu1 }
 0x2cc   : > { %v628_v55 = vpop.trf.xlu1 }
 0x337   : > { %v516_v51 = vpop.xlane.xlu0 %515 }
 0x338   : > { %1138 = vrcp.f32 %v516_v51 }
 0x345   : > { %v1139_v53 = vpop.eup %1138 }
 0x346   : > { %v518_v54 = vmul.f32 %v1139_v53, %v1137_v49 }
 0x348   : > { %1047 = vmatmul.mubr.msk.f32.vlgmr.msra.gmra.mxu1 %vm505_vm1, %v518_v54 }
 0x349   : > { %1050 = vmatpush3.msra.mxu1 %v339_v18  ;;  %1051 = vmatprep.mubr.msk.f32.mxu1 %vm643_vm2, %v627_v52 }
 0x34c   : > { %1052 = vmatmul.mubr.msk.f32.vlgmr.msra.gmra.mxu1 %vm643_vm2, %v628_v55 }
 0x408   : > { %v588_v56 = vpop.f32.mrf.mxu1 }
 0x409   : > { %592 = vst [vmem:[%s324_s14] sm:$0xff] %v588_v56 }
 0x40a   : > { %v1048_v57 = vpop.f32.mrf.mxu1 }
 0x40b   : > { %1235 = shalt.err (!%p1232_p2)
}
 0x40c   : > { %s1236_s30 = scalar_lea.hbm %s1633_s16, 128  ;;  %s1240_s20 = scalar_lea.hbm %s1756_s4, 256 }
 0x40d   : > { %p1237_p1 = scmp.ne.s32.totalorder %s1633_s16, %s1236_s30  ;;  %p1241_p6 = scmp.lt.s32.totalorder %s1633_s16, %s1756_s4 }
 0x40e   : > { %p1242_p11 = scmp.lt.s32.totalorder %s1240_s20, %s1236_s30 }
 0x40f   : > { %p1238_p4 = pnand %p1237_p1, %p1783_p9 }
 0x410   : > { %p1243_p8 = por %p1242_p11, %p1241_p6 }
 0x411   : > { %p1239_p7 = pneg %p1238_p4 }
 0x413   : > { %p1244_p3 = pnand %p1243_p8, %p1239_p7 }
 0x415   : > { %1247 = shalt.err (!%p1244_p3)
}
 0x416   : > { %1062 = dma.vmem_to_hbm [thread:$0]  (%p1783_p9), %s1626_s8, 128, %s1633_s16, %s728_s27   ;;  %v1053_v58 = vpop.f32.mrf.mxu1 }
 0x417   : > { %s780_s29 = sshll.u32 %s338_s7, 4  ;;  %s1784_s10 = sshll.u32 %s1420_s25, 8  ;;  %726 = vst [vmem:[%s1637_s15 + $0x8] sm:$0xff] %v1053_v58  ;;  %s1683_s29 = int_to_ptr.vmem [resolvable:$true] %s780_s29 }
 0x418   : > { %s1673_s26 = scalar_lea.hbm %s1757_s5, %s1784_s10  ;;  %v716_v59 = vpop.f32.mrf.mxu1  ;;  %s1785_s30 = sshll.u32 %s1420_s25, 7 }
 0x419   : > { %s1681_s16 = scalar_lea.hbm %s1758_s6, %s1785_s30  ;;  %725 = vst [vmem:[%s1637_s15] sm:$0xff] %v716_v59  ;;  %s1786_s12 = sand.u32 1, %s1420_s25  }
 0x41a   : > { %s1688_s7 = scalar_lea.sflag [#allocation10], %s1786_s12  ;;  %s1248_s27 = scalar_lea.vmem %s1664_s2, 256 }
 0x41b   : > { %p1249_p10 = scmp.ne.s32.totalorder %s1664_s2, %s1248_s27  ;;  %s1360_s14 = smov [#allocation9]  }
 0x41c   : > { %s1252_s20 = sshll.u32 %s1360_s14, 4  ;;  %s1253_s20 = int_to_ptr.vmem [resolvable:$false] %s1252_s20 }
 0x41d   : > { %p1250_p12 = pnand %p1249_p10, %p1783_p9  ;;  %s1254_s10 = scalar_lea.vmem %s1253_s20, 512 }
 0x41e   : > { %p1255_p0 = scmp.lt.s32.totalorder %s1664_s2, %s1253_s20  ;;  %p1256_p5 = scmp.lt.s32.totalorder %s1254_s10, %s1248_s27 }
 0x41f   : > { %p1251_p13 = pneg %p1250_p12 }
 0x420   : > { %p1257_p2 = por %p1256_p5, %p1255_p0 }
 0x422   : > { %p1258_p1 = pnand %p1257_p2, %p1251_p13 }
 0x424   : > { %1261 = shalt.err (!%p1258_p1)
}
 0x425   : > { %s1262_s25 = scalar_lea.hbm %s1673_s26, 256  ;;  %s1266_s13 = scalar_lea.hbm %s1757_s5, 512 }
 0x426   : > { %p1263_p4 = scmp.ne.s32.totalorder %s1673_s26, %s1262_s25  ;;  %p1267_p11 = scmp.lt.s32.totalorder %s1673_s26, %s1757_s5 }
 0x427   : > { %p1268_p8 = scmp.lt.s32.totalorder %s1266_s13, %s1262_s25 }
 0x428   : > { %p1264_p7 = pnand %p1263_p4, %p1783_p9 }
 0x429   : > { %p1269_p3 = por %p1268_p8, %p1267_p11 }
 0x42a   : > { %p1265_p6 = pneg %p1264_p7 }
 0x42c   : > { %p1270_p10 = pnand %p1269_p3, %p1265_p6 }
 0x42e   : > { %1273 = shalt.err (!%p1270_p10)
}
 0x42f   : > { %s1361_s8 = smov 128   ;;  %s1362_s12 = smov 8  }
 0x430   : > { %1063 = dma.vmem_to_hbm [thread:$0]  (%p1783_p9), %s1664_s2, 256, %s1673_s26, %s1688_s7, %s1361_s8, %s1361_s8, %s1362_s12  }
 0x431   : > { %s1274_s27 = scalar_lea.vmem %s1683_s29, 128  ;;  %s1363_s14 = smov [#allocation11]  }
 0x432   : > { %p1275_p12 = scmp.ne.s32.totalorder %s1683_s29, %s1274_s27  ;;  %s1278_s20 = sshll.u32 %s1363_s14, 4  ;;  %s1279_s20 = int_to_ptr.vmem [resolvable:$false] %s1278_s20 }
 0x433   : > { %s1280_s10 = scalar_lea.vmem %s1279_s20, 256  ;;  %p1281_p5 = scmp.lt.s32.totalorder %s1683_s29, %s1279_s20 }
 0x434   : > { %p1276_p13 = pnand %p1275_p12, %p1783_p9  ;;  %p1282_p2 = scmp.lt.s32.totalorder %s1280_s10, %s1274_s27 }
 0x436   : > { %p1277_p0 = pneg %p1276_p13  ;;  %p1283_p1 = por %p1282_p2, %p1281_p5 }
 0x438   : > { %p1284_p4 = pnand %p1283_p1, %p1277_p0 }
 0x43a   : > { %1287 = shalt.err (!%p1284_p4)
}
 0x43b   : > { %s1288_s25 = scalar_lea.hbm %s1681_s16, 128  ;;  %s1292_s15 = scalar_lea.hbm %s1758_s6, 256 }
 0x43c   : > { %p1289_p7 = scmp.ne.s32.totalorder %s1681_s16, %s1288_s25  ;;  %p1293_p8 = scmp.lt.s32.totalorder %s1681_s16, %s1758_s6 }
 0x43d   : > { %p1294_p3 = scmp.lt.s32.totalorder %s1292_s15, %s1288_s25 }
 0x43e   : > { %p1290_p6 = pnand %p1289_p7, %p1783_p9 }
 0x43f   : > { %p1295_p10 = por %p1294_p3, %p1293_p8 }
 0x440   : > { %p1291_p11 = pneg %p1290_p6 }
 0x442   : > { %p1296_p12 = pnand %p1295_p10, %p1291_p11 }
 0x444   : > { %1299 = shalt.err (!%p1296_p12)
}
 0x445   : > { %1064 = dma.vmem_to_hbm [thread:$0]  (%p1783_p9), %s1683_s29, 128, %s1681_s16, %s1688_s7  }
 0x446 PF: > { %s792_s30 = sand.u32 1, %s1338_s21   ;;  %p1787_p13 = scmp.ne.s32.totalorder %s1770_s28, 0 }
 0x447   : > { %p1788_p0 = scmp.ge.s32.totalorder %s1350_s24, 2  ;;  %s793_s11 = scalar_lea.sflag [#allocation4], %s792_s30 }
 0x449   : > { %p1080_p5 = pnand %p1788_p0, %p1787_p13 }
 0x44b   : > { %p1081_p2 = pneg %p1080_p5 }
 0x44d   : > { %1329 = dma.done.wait (%p1081_p2), %s793_s11, 128  }
 0x44e   : > { %1331 = vsyncadd (%p1081_p2), %s793_s11, 4294967168  ;;  %s1789_s8 = sadd.s32 4294967294, %s1350_s24  }
 0x44f   : > { %s801_s12 = sand.u32 1, %s1789_s8  }
 0x450   : > { %s802_s18 = scalar_lea.sflag [#allocation10], %s801_s12 }
 0x451   : > { %1333 = dma.done.wait (%p1081_p2), %s802_s18, 384  }
 0x452   : > { %1335 = vsyncadd (%p1081_p2), %s802_s18, 4294966912  ;;  %p26_p9 = scmp.ge.s32.totalorder %s1455_s9, 4   ;;  %s1790_s21 = smov %s1342_s22 }
 0x453   : > { %s1791_s22 = smov %s1346_s23  ;;  %s1792_s23 = smov %s1475_s17 }
 0x454   : > { %s1793_s24 = smov %s1455_s9  ;;  %28 = sbr.rel (!%p26_p9) target bundleno = 11 (0xb), region = 130 }
 0x459   :  { %816 = vsyncpa [#allocation3], 1 }
 0x45a   :  { %818 = vsyncpa [#allocation3 + $0x1], 1 }
 0x45b   :  { %819 = vsyncpa [#allocation6], 1 }
 0x45c   :  { %821 = vsyncpa [#allocation6 + $0x1], 1 }
 0x45d   :  { %822 = vsyncpa [#allocation4], 1 }
 0x45e   :  { %824 = vsyncpa [#allocation4 + $0x1], 1 }
 0x45f   :  { %825 = vsyncpa [#allocation10], 1 }
 0x460   :  { %827 = vsyncpa [#allocation10 + $0x1], 1 }

</bundles_post_ra>
